<compile_context>
chip_gen: v7x
topology: tpu7x:2x2x1
jax: 0.10.0
libtpu: 0.0.40
codegen_flags: <defaults>
</compile_context>

<pallas_src>
import jax
import jax.numpy as jnp
from jax.experimental import pallas as pl
from jax.experimental.pallas import tpu as pltpu

LANES = 128
SUBLANES = 8
_MIN_PALLAS_BYTES = 1 * 1024 * 1024      # below this, plain XLA fusion is faster
_MIN_GRID_STEPS = 4                      # keep the pipeline streaming (no 1-step grids)
_FALLBACK_VMEM_LIMIT = 32 * 1024 * 1024  # used if get_tpu_info() is unavailable
_FALLBACK_TILE_BYTES = 2 * 1024 * 1024


def _mae_kernel(pred_ref, raw_ref, out_ref):
    # Native-dtype math (matches PyTorch: pred**2 and L1 diff in the input dtype).
    p = pred_ref[...]
    r = raw_ref[...]
    out_ref[...] = jnp.abs(p * p - r)


def _pick_width(n):
    # Largest lane-dense slab width (multiple of 128) that divides n exactly,
    # so the flatten is a free reshape (no pad copy).
    for w in (4096, 2048, 1024, 512, 256, 128):
        if n % w == 0:
            return w
    return 0


def _sublane_pack(itemsize):
    # Native sublane packing granularity: 8 rows for 4-byte, 16 for 2-byte, 32 for 1-byte.
    return max(SUBLANES, 32 // max(1, itemsize))


def _vmem_budget():
    """(vmem_limit_bytes, max_tile_bytes_per_operand), generation-aware."""
    cap = 0
    try:
        cap = int(pltpu.get_tpu_info().vmem_capacity_bytes)
    except Exception:
        cap = 0
    if cap <= 0:
        return _FALLBACK_VMEM_LIMIT, _FALLBACK_TILE_BYTES
    # 5/8 of physical VMEM, capped at 64 MiB:
    #   128 MiB parts (v5e/v6e) -> 64 MiB limit, 8 MiB tiles (3 ops x 2 bufs = 48 MiB)
    #    64 MiB parts (v7x)     -> 40 MiB limit, 5 MiB tiles (3 ops x 2 bufs = 30 MiB)
    limit = min((cap * 5) // 8, 64 * 1024 * 1024)
    tile = max(2 * 1024 * 1024, limit // 8)
    return limit, tile


def _dimension_semantics():
    # Only CORE_PARALLEL actually shards a grid axis across multiple TensorCores (v7x);
    # fall back to "parallel" on single-TC parts (v5e/v6e) where it is a measured no-op.
    n_cores = 1
    try:
        info = pltpu.get_tpu_info()
        for attr in ("num_cores", "num_tensorcores", "tensorcores_per_chip", "core_count"):
            v = getattr(info, attr, None)
            if isinstance(v, int) and v > 0:
                n_cores = v
                break
    except Exception:
        pass
    if n_cores <= 1:
        try:
            n_cores = int(getattr(jax.devices()[0], "num_cores", 1) or 1)
        except Exception:
            n_cores = 1
    if n_cores > 1 and hasattr(pltpu, "CORE_PARALLEL"):
        return (pltpu.CORE_PARALLEL,)
    return ("parallel",)


def mae_loss(pred, raw, *, min_pallas_bytes=_MIN_PALLAS_BYTES, max_tile_bytes=None):
    """Elementwise |pred**2 - raw|; same shape as inputs (reduction='none')."""
    assert pred.shape == raw.shape, "pred/raw must have the same shape"
    orig_shape = pred.shape

    # PyTorch would type-promote pred**2 vs raw; do so explicitly and compute/return
    # in the promoted dtype.
    out_dtype = jnp.promote_types(pred.dtype, raw.dtype)
    pred = pred.astype(out_dtype)
    raw = raw.astype(out_dtype)
    itemsize = jnp.dtype(out_dtype).itemsize

    n = 1
    for d in orig_shape:
        n *= d

    width = _pick_width(n)

    # Fast path: tiny inputs (per-step overhead dominates) or element counts not divisible
    # by 128 (a pad copy would double HBM traffic for a mem-bound op).
    if n == 0 or width == 0 or n * itemsize < min_pallas_bytes:
        return jnp.abs(pred * pred - raw).astype(out_dtype)

    rows = n // width
    pack = _sublane_pack(itemsize)

    vmem_limit_bytes, auto_tile_bytes = _vmem_budget()
    tile_bytes = auto_tile_bytes if max_tile_bytes is None else max_tile_bytes

    if rows < pack:
        # Degenerate slab: use the full dim (always layout-legal), single grid step.
        block_rows = rows
    else:
        # MiB-scale row tiles, rounded to the dtype's sublane packing granularity.
        block_rows = max(pack, (tile_bytes // (width * itemsize)) // pack * pack)
        # Never collapse to a 1-step grid: cap block_rows so the grid has >= _MIN_GRID_STEPS
        # steps (when rows allow), keeping DMA-in / compute / DMA-out overlapped.
        step_cap = max(pack, (pl.cdiv(rows, _MIN_GRID_STEPS) // pack) * pack)
        block_rows = min(block_rows, step_cap)

    grid = (pl.cdiv(rows, block_rows),)  # partial last block is masked by Pallas

    # Free reshape of the contiguous NCHW buffer into the lane-dense slab.
    pred2d = pred.reshape(rows, width)
    raw2d = raw.reshape(rows, width)

    out2d = pl.pallas_call(
        _mae_kernel,
        out_shape=jax.ShapeDtypeStruct((rows, width), out_dtype),
        grid_spec=pltpu.PrefetchScalarGridSpec(
            num_scalar_prefetch=0,
            grid=grid,
            in_specs=[
                pl.BlockSpec((block_rows, width), lambda i: (i, 0)),
                pl.BlockSpec((block_rows, width), lambda i: (i, 0)),
            ],
            out_specs=pl.BlockSpec((block_rows, width), lambda i: (i, 0)),
        ),
        compiler_params=pltpu.CompilerParams(
            dimension_semantics=_dimension_semantics(),
            vmem_limit_bytes=vmem_limit_bytes,
        ),
        cost_estimate=pl.CostEstimate(
            flops=3 * n, transcendentals=0, bytes_accessed=3 * n * itemsize),
    )(pred2d, raw2d)

    return out2d.reshape(orig_shape)


if __name__ == "__main__":
    key = jax.random.PRNGKey(0)
    k1, k2, k3, k4, k5, k6 = jax.random.split(key, 6)

    # Primary NCHW test shape (B, C, H, W) consistent with the module's usage.
    B, C, H, W = 2, 4, 16, 16
    pred = jax.random.normal(k1, (B, C, H, W), dtype=jnp.float32)
    raw = jax.random.uniform(k2, (B, C, H, W), dtype=jnp.float32)

    # Force the Pallas path even though this test input is tiny.
    out = jax.block_until_ready(mae_loss(pred, raw, min_pallas_bytes=0))
    ref = jnp.abs(pred ** 2 - raw)
    assert out.shape == (B, C, H, W) and out.dtype == pred.dtype
    assert jnp.allclose(out, ref, atol=1e-6), "Pallas path mismatch vs reference"

    # Default call hits the small-input fast path; must match too.
    out_fast = jax.block_until_ready(mae_loss(pred, raw))
    assert jnp.allclose(out_fast, ref, atol=1e-6), "fast path mismatch vs reference"

    # Slab (19, 128) with tiny forced tiles -> multi-step grid with a masked partial
    # last row-block.
    pred2 = jax.random.normal(k3, (1, 19, 8, 16), dtype=jnp.float32)
    raw2 = jax.random.uniform(k4, (1, 19, 8, 16), dtype=jnp.float32)
    out2 = jax.block_until_ready(
        mae_loss(pred2, raw2, min_pallas_bytes=0,
                 max_tile_bytes=SUBLANES * LANES * 4))
    ref2 = jnp.abs(pred2 ** 2 - raw2)
    assert jnp.allclose(out2, ref2, atol=1e-6), "partial-block path mismatch"

    # Medium input with auto (generation-aware) tile sizing and the multi-step cap.
    pred3 = jax.random.normal(k5, (2, 4, 64, 128), dtype=jnp.float32)
    raw3 = jax.random.uniform(k6, (2, 4, 64, 128), dtype=jnp.float32)
    out3 = jax.block_until_ready(mae_loss(pred3, raw3, min_pallas_bytes=0))
    ref3 = jnp.abs(pred3 ** 2 - raw3)
    assert jnp.allclose(out3, ref3, atol=1e-6), "auto-tile path mismatch"

    print("KERNEL_OK")
</pallas_src>

<mosaic_0001>
module attributes {stable_mosaic.version = 11 : i64} {
  func.func @_mae_kernel(%arg0: i32, %arg1: memref<1x2048xf32, #tpu.memory_space<vmem>>, %arg2: memref<1x2048xf32, #tpu.memory_space<vmem>>, %arg3: memref<1x2048xf32, #tpu.memory_space<vmem>>) attributes {dimension_semantics = [#tpu.dimension_semantics<parallel>], iteration_bounds = array<i64: 1>, scalar_prefetch = 0 : i64, scratch_operands = 0 : i64, tpu.core_type = #tpu.core_type<tc>, window_params = [{transform_indices = @transform_0, window_bounds = array<i64: 1, 2048>}, {transform_indices = @transform_1, window_bounds = array<i64: 1, 2048>}, {transform_indices = @transform_2, window_bounds = array<i64: 1, 2048>}]} {
    %c0 = arith.constant 0 : index
    %c0_0 = arith.constant 0 : index
    %0 = vector.load %arg1[%c0, %c0_0] : memref<1x2048xf32, #tpu.memory_space<vmem>>, vector<1x2048xf32>
    %c0_1 = arith.constant 0 : index
    %c0_2 = arith.constant 0 : index
    %1 = vector.load %arg2[%c0_1, %c0_2] : memref<1x2048xf32, #tpu.memory_space<vmem>>, vector<1x2048xf32>
    %2 = arith.mulf %0, %0 : vector<1x2048xf32>
    %3 = arith.subf %2, %1 : vector<1x2048xf32>
    %4 = math.absf %3 : vector<1x2048xf32>
    %c0_3 = arith.constant 0 : index
    %c0_4 = arith.constant 0 : index
    %5 = vector.load %arg3[%c0_3, %c0_4] : memref<1x2048xf32, #tpu.memory_space<vmem>>, vector<1x2048xf32>
    tpu.vector_store %arg3[%c0_3, %c0_4], %4 {strides = array<i32>} : memref<1x2048xf32, #tpu.memory_space<vmem>>, vector<1x2048xf32>,
    return
  }
  func.func @transform_0(%arg0: i32) -> (i32, i32) {
    %c0_i32 = arith.constant 0 : i32
    %c0_i32_0 = arith.constant 0 : i32
    return %arg0, %c0_i32 : i32, i32
  }
  func.func @transform_1(%arg0: i32) -> (i32, i32) {
    %c0_i32 = arith.constant 0 : i32
    %c0_i32_0 = arith.constant 0 : i32
    return %arg0, %c0_i32 : i32, i32
  }
  func.func @transform_2(%arg0: i32) -> (i32, i32) {
    %c0_i32 = arith.constant 0 : i32
    %c0_i32_0 = arith.constant 0 : i32
    return %arg0, %c0_i32 : i32, i32
  }
}

</mosaic_0001>

<bundles_post_ra>
// kernel: tpu_custom_call.1
= control target key start
LH: loop header
LB: loop body
LE: loop exit
PB: predicated region body
PF: predicated region fallthrough
CT: control target
= control target key end

     0   :  { %7 = vsyncpa [#allocation3], 0  ;;  %s193_s0 = inlined_call_operand.hbm [shape: f32[1,2048], index: 0, kind: input, shape index: {}]   ;;  %s194_s1 = inlined_call_operand.hbm [shape: f32[1,2048], index: 1, kind: input, shape index: {}]   ;;  %s195_s2 = inlined_call_operand.hbm [shape: f32[1,2048], index: 2, kind: output, shape index: {}]  }
   0x1   :  { %8 = vsyncpa [#allocation6], 0 }
   0x2   :  { %9 = vsyncpa [#allocation4], 0  ;;  %s139_s9 = smov [#allocation2]   ;;  %s140_s11 = smov [#allocation5]  }
   0x3   :  { %s16_s10 = sshll.u32 %s139_s9, 4  ;;  %s26_s12 = sshll.u32 %s140_s11, 4  ;;  %s17_s10 = int_to_ptr.vmem [resolvable:$true] %s16_s10  ;;  %s27_s12 = int_to_ptr.vmem [resolvable:$true] %s26_s12 }
   0x4   :  { %s67_s15 = scalar_lea.hbm %s193_s0, 256 }
   0x5   :  { %p68_p0 = scmp.ne.s32.totalorder %s193_s0, %s67_s15  ;;  %p71_p1 = scmp.lt.u32.totalorder %s67_s15, %s193_s0 }
   0x7   :  { %p73_p2 = pnand %p71_p1, %p68_p0 }
   0x9   :  { %76 = shalt.err (!%p73_p2)
}
   0xa   :  { %s77_s20 = scalar_lea.vmem %s17_s10, 256  ;;  %p82_p4 = scmp.lt.s32.totalorder %s17_s10, %s17_s10 }
   0xb   :  { %p78_p3 = scmp.ne.s32.totalorder %s17_s10, %s77_s20  ;;  %p83_p5 = scmp.lt.s32.totalorder %s77_s20, %s77_s20 }
   0xd   :  { %p84_p6 = por %p83_p5, %p82_p4 }
   0xf   :  { %p85_p7 = pnand %p84_p6, %p78_p3 }
  0x11   :  { %88 = shalt.err (!%p85_p7)
}
  0x12   :  { %19 = dma.hbm_to_vmem [thread:$0]  %s193_s0, 256, %s17_s10, [#allocation3]  }
  0x13   :  { %s89_s25 = scalar_lea.hbm %s194_s1, 256 }
  0x14   :  { %p90_p8 = scmp.ne.s32.totalorder %s194_s1, %s89_s25  ;;  %p93_p9 = scmp.lt.u32.totalorder %s89_s25, %s194_s1 }
  0x16   :  { %p95_p10 = pnand %p93_p9, %p90_p8 }
  0x18   :  { %98 = shalt.err (!%p95_p10)
}
  0x19   :  { %s99_s30 = scalar_lea.vmem %s27_s12, 256  ;;  %p104_p12 = scmp.lt.s32.totalorder %s27_s12, %s27_s12 }
  0x1a   :  { %p100_p11 = scmp.ne.s32.totalorder %s27_s12, %s99_s30  ;;  %p105_p13 = scmp.lt.s32.totalorder %s99_s30, %s99_s30 }
  0x1c   :  { %p106_p0 = por %p105_p13, %p104_p12 }
  0x1e   :  { %p107_p1 = pnand %p106_p0, %p100_p11 }
  0x20   :  { %110 = shalt.err (!%p107_p1)
}
  0x21   :  { %29 = dma.hbm_to_vmem [thread:$0]  %s194_s1, 256, %s27_s12, [#allocation6]  }
  0x22   :  { %133 = dma.done.wait [#allocation3], 256  }
  0x23   :  { %134 = vsyncadd [#allocation3], 4294967040 }
  0x24   :  { %135 = dma.done.wait [#allocation6], 256  }
  0x25   :  { %136 = vsyncadd [#allocation6], 4294967040  ;;  %v36_v0 = vld [vmem:[#allocation2] sm:$0xff]  ;;  %v38_v1 = vld [vmem:[#allocation5] sm:$0xff]  ;;  %s141_s4 = smov [#allocation7]  }
  0x26   :  { %v37_v2 = vld [vmem:[#allocation2 + $0x8] sm:$0xff]  ;;  %v40_v3 = vmul.f32 %v36_v0, %v36_v0  ;;  %v39_v4 = vld [vmem:[#allocation5 + $0x8] sm:$0xff]  ;;  %s54_s5 = sshll.u32 %s141_s4, 4  ;;  %s55_s5 = int_to_ptr.vmem [resolvable:$true] %s54_s5 }
  0x27   :  { %v41_v5 = vmul.f32 %v37_v2, %v37_v2  ;;  %s111_s1 = scalar_lea.vmem %s55_s5, 256  ;;  %p116_p3 = scmp.lt.s32.totalorder %s55_s5, %s55_s5 }
  0x28   :  { %v42_v6 = vsub.f32 %v40_v3, %v38_v1  ;;  %p112_p2 = scmp.ne.s32.totalorder %s55_s5, %s111_s1  ;;  %p117_p4 = scmp.lt.s32.totalorder %s111_s1, %s111_s1 }
  0x29   :  { %v43_v7 = vsub.f32 %v41_v5, %v39_v4 }
  0x2a   :  { %v44_v8 = vand.u32 2147483647, %v42_v6  ;;  %p118_p5 = por %p117_p4, %p116_p3 }
  0x2b   :  { %v45_v9 = vand.u32 2147483647, %v43_v7 }
  0x2c   :  { %46 = vst [vmem:[#allocation7] sm:$0xff] %v44_v8  ;;  %p119_p6 = pnand %p118_p5, %p112_p2 }
  0x2d   :  { %47 = vst [vmem:[#allocation7 + $0x8] sm:$0xff] %v45_v9 }
  0x2e   :  { %122 = shalt.err (!%p119_p6)
}
  0x2f   :  { %s123_s8 = scalar_lea.hbm %s195_s2, 256 }
  0x30   :  { %p124_p7 = scmp.ne.s32.totalorder %s195_s2, %s123_s8  ;;  %p127_p8 = scmp.lt.u32.totalorder %s123_s8, %s195_s2 }
  0x32   :  { %p129_p9 = pnand %p127_p8, %p124_p7 }
  0x34   :  { %132 = shalt.err (!%p129_p9)
}
  0x35   :  { %57 = dma.vmem_to_hbm [thread:$0]  %s55_s5, 256, %s195_s2, [#allocation4]  }
  0x36   :  { %137 = dma.done.wait [#allocation4], 256  }
  0x37   :  { %138 = vsyncadd [#allocation4], 4294967040 }
  0x38   :  { %61 = vsyncpa [#allocation3], 1 }
  0x39   :  { %62 = vsyncpa [#allocation6], 1 }
  0x3a   :  { %63 = vsyncpa [#allocation4], 1 }

</bundles_post_ra>
